<compile_context>
chip_gen: v6e
topology: v6e:2x2x1
jax: 0.10.0
libtpu: 0.0.40
codegen_flags: <defaults>
</compile_context>

<pallas_src>
import functools

import jax
import jax.numpy as jnp
from jax.experimental import pallas as pl
from jax.experimental.pallas import tpu as pltpu

LANE = 128
SUBLANE = 8


def _round_up(n: int, m: int) -> int:
    return ((n + m - 1) // m) * m


def _pad2d(a, rows: int, cols: int):
    return jnp.pad(a, ((0, rows - a.shape[0]), (0, cols - a.shape[1])))


def dqn_mlp_kernel(x_ref, w1_ref, b1_ref, w2_ref, b2_ref, w3_ref, b3_ref, o_ref):
    # Cast the narrow f32 input to the MXU compute dtype inside the kernel.
    x = x_ref[...].astype(w1_ref.dtype)
    # Layer 1: Linear (MXU, f32 accumulate) + f32 bias/ReLU epilogue (v5e-safe).
    h = jnp.dot(x, w1_ref[...], preferred_element_type=jnp.float32)
    h = jnp.maximum(h + b1_ref[...], 0.0)
    # Layer 2.
    h = jnp.dot(h.astype(w2_ref.dtype), w2_ref[...],
                preferred_element_type=jnp.float32)
    h = jnp.maximum(h + b2_ref[...], 0.0)
    # Output layer (no activation); store only the real out_dim lanes.
    out = jnp.dot(h.astype(w3_ref.dtype), w3_ref[...],
                  preferred_element_type=jnp.float32) + b3_ref[...]
    o_ref[...] = out[:, : o_ref.shape[1]].astype(o_ref.dtype)


def prepare_params(params, compute_dtype=jnp.bfloat16):
    """Pad/cast weights ONCE (call outside the training/acting loop).

    Weights -> compute_dtype with hidden/output lanes zero-padded to 128;
    biases -> f32 (f32 epilogue). Zero padding is inert through matmul + ReLU.
    """
    w1, b1, w2, b2, w3, b3 = params
    in_dim, hid = w1.shape
    out_dim = w3.shape[1]
    hid_p = _round_up(hid, LANE)
    out_p = _round_up(out_dim, LANE)

    w1p = _pad2d(w1, in_dim, hid_p).astype(compute_dtype)   # (in_dim, 128)
    w2p = _pad2d(w2, hid_p, hid_p).astype(compute_dtype)    # (128, 128)
    w3p = _pad2d(w3, hid_p, out_p).astype(compute_dtype)    # (128, 128)
    b1p = _pad2d(b1, 1, hid_p).astype(jnp.float32)
    b2p = _pad2d(b2, 1, hid_p).astype(jnp.float32)
    b3p = _pad2d(b3, 1, out_p).astype(jnp.float32)
    return (w1p, b1p, w2p, b2p, w3p, b3p), out_dim


def _choose_tile(batch: int, batch_tile: int) -> int:
    """Batch tile: single tiny tile for interactive batches, else >=2 large tiles."""
    b_r = _round_up(batch, SUBLANE)
    if b_r <= 2 * SUBLANE:          # action-selection path (B=1..16): one grid step
        return b_r
    # Replay path: at least 2 grid steps (v7x megacore), each tile <= batch_tile rows.
    return min(batch_tile, _round_up((b_r + 1) // 2, SUBLANE))


@functools.partial(jax.jit, static_argnames=("out_dim", "batch_tile"))
def dqn_forward(x, padded_params, *, out_dim, batch_tile=1024):
    """Fused DQNAgent forward pass. x: [B, in_dim] f32 -> [B, out_dim] f32 Q-values."""
    w1p, b1p, w2p, b2p, w3p, b3p = padded_params
    B, in_dim = x.shape

    TB = _choose_tile(B, batch_tile)
    B_p = _round_up(B, TB)
    # Only pad batch rows (f32, narrow feature dim) when B isn't a tile multiple.
    xp = x if B_p == B else jnp.pad(x, ((0, B_p - B), (0, 0)))

    # Input/output blocks: last dim == full array dim, so (8,128) rule is satisfied
    # without any lane padding of the activations.
    x_spec = pl.BlockSpec((TB, in_dim), lambda i: (i, 0))
    o_spec = pl.BlockSpec((TB, out_dim), lambda i: (i, 0))
    # Constant index_map -> block revisited every step -> weights stay VMEM-resident.
    resident = lambda shape: pl.BlockSpec(shape, lambda i: (0, 0))

    out_padded = pl.pallas_call(
        dqn_mlp_kernel,
        out_shape=jax.ShapeDtypeStruct((B_p, out_dim), jnp.float32),
        grid_spec=pltpu.PrefetchScalarGridSpec(
            num_scalar_prefetch=0,
            grid=(B_p // TB,),
            in_specs=[
                x_spec,
                resident(w1p.shape), resident(b1p.shape),
                resident(w2p.shape), resident(b2p.shape),
                resident(w3p.shape), resident(b3p.shape),
            ],
            out_specs=o_spec,
        ),
        compiler_params=pltpu.CompilerParams(
            dimension_semantics=("parallel",),   # megacore sharding of batch tiles
            vmem_limit_bytes=32 * 1024 * 1024,
        ),
    )(xp, w1p, b1p, w2p, b2p, w3p, b3p)

    # Only the padded batch rows need slicing off; output width is already out_dim.
    return out_padded[:B] if B_p != B else out_padded


def init_params(key, input_size, hidden, output_size):
    """PyTorch nn.Linear-style init (uniform +-1/sqrt(fan_in)); W stored as [in, out]."""
    ks = jax.random.split(key, 6)

    def linear(kw, kb, fan_in, fan_out):
        bound = 1.0 / jnp.sqrt(fan_in)
        w = jax.random.uniform(kw, (fan_in, fan_out), jnp.float32, -bound, bound)
        b = jax.random.uniform(kb, (1, fan_out), jnp.float32, -bound, bound)
        return w, b

    w1, b1 = linear(ks[0], ks[1], input_size, hidden)
    w2, b2 = linear(ks[2], ks[3], hidden, hidden)
    w3, b3 = linear(ks[4], ks[5], hidden, output_size)
    return (w1, b1, w2, b2, w3, b3)


def _ref_forward(x, params, compute_dtype=None):
    """Plain-JAX reference; optionally with the same bf16 quantization as the kernel."""
    w1, b1, w2, b2, w3, b3 = params
    cast = (lambda a: a.astype(compute_dtype)) if compute_dtype else (lambda a: a)
    h = jnp.dot(cast(x), cast(w1), preferred_element_type=jnp.float32) + b1
    h = jnp.maximum(h, 0.0)
    h = jnp.dot(cast(h), cast(w2), preferred_element_type=jnp.float32) + b2
    h = jnp.maximum(h, 0.0)
    return jnp.dot(cast(h), cast(w3), preferred_element_type=jnp.float32) + b3


if __name__ == "__main__":
    # LunarLander-like: state dim 8, hidden 32, n_actions = output_size = 4.
    input_size, hidden, n_actions = 8, 32, 4
    output_size = n_actions

    key = jax.random.PRNGKey(0)
    k_x, k_x2, k_p = jax.random.split(key, 3)
    params = init_params(k_p, input_size, hidden, output_size)

    # Pad/cast the weights exactly once (canonical agent params for the kernel).
    # NOTE: inputs are quantized to bf16 before the first matmul — a deliberate
    # choice; Q-values may differ from an f32 reference by ~1e-2.
    padded_params, out_dim = prepare_params(params)

    # 1) Interactive action-selection path: tiny batch, single grid step.
    x_small = jax.random.normal(k_x, (2, input_size), dtype=jnp.float32)
    q_small = jax.block_until_ready(dqn_forward(x_small, padded_params, out_dim=out_dim))
    assert q_small.shape == (2, output_size)
    assert jnp.allclose(q_small, _ref_forward(x_small, params, jnp.bfloat16),
                        atol=1e-3, rtol=1e-3)
    assert jnp.allclose(q_small, _ref_forward(x_small, params),
                        atol=5e-2, rtol=5e-2)

    # 2) Replay-batch path: non-multiple batch -> 2 parallel tiles + row padding.
    x_big = jax.random.normal(k_x2, (200, input_size), dtype=jnp.float32)
    q_big = jax.block_until_ready(dqn_forward(x_big, padded_params, out_dim=out_dim))
    assert q_big.shape == (200, output_size)
    assert jnp.allclose(q_big, _ref_forward(x_big, params, jnp.bfloat16),
                        atol=1e-3, rtol=1e-3)
    assert jnp.allclose(q_big, _ref_forward(x_big, params),
                        atol=5e-2, rtol=5e-2)

    print("KERNEL_OK")
</pallas_src>

<mosaic_0001>
module attributes {stable_mosaic.version = 11 : i64} {
  func.func @dqn_mlp_kernel(%arg0: i32, %arg1: memref<8x8xf32, #tpu.memory_space<vmem>>, %arg2: memref<8x128xbf16, #tpu.memory_space<vmem>>, %arg3: memref<1x128xf32, #tpu.memory_space<vmem>>, %arg4: memref<128x128xbf16, #tpu.memory_space<vmem>>, %arg5: memref<1x128xf32, #tpu.memory_space<vmem>>, %arg6: memref<128x128xbf16, #tpu.memory_space<vmem>>, %arg7: memref<1x128xf32, #tpu.memory_space<vmem>>, %arg8: memref<8x4xf32, #tpu.memory_space<vmem>>) attributes {dimension_semantics = [#tpu.dimension_semantics<parallel>], iteration_bounds = array<i64: 1>, scalar_prefetch = 0 : i64, scratch_operands = 0 : i64, tpu.core_type = #tpu.core_type<tc>, window_params = [{transform_indices = @transform_0, window_bounds = array<i64: 8, 8>}, {pipeline_mode = #tpu.pipeline_mode<synchronous>, transform_indices = @transform_1, window_bounds = array<i64: 8, 128>}, {pipeline_mode = #tpu.pipeline_mode<synchronous>, transform_indices = @transform_2, window_bounds = array<i64: 1, 128>}, {pipeline_mode = #tpu.pipeline_mode<synchronous>, transform_indices = @transform_3, window_bounds = array<i64: 128, 128>}, {pipeline_mode = #tpu.pipeline_mode<synchronous>, transform_indices = @transform_4, window_bounds = array<i64: 1, 128>}, {pipeline_mode = #tpu.pipeline_mode<synchronous>, transform_indices = @transform_5, window_bounds = array<i64: 128, 128>}, {pipeline_mode = #tpu.pipeline_mode<synchronous>, transform_indices = @transform_6, window_bounds = array<i64: 1, 128>}, {transform_indices = @transform_7, window_bounds = array<i64: 8, 4>}]} {
    %c0 = arith.constant 0 : index
    %c0_0 = arith.constant 0 : index
    %0 = vector.load %arg1[%c0, %c0_0] : memref<8x8xf32, #tpu.memory_space<vmem>>, vector<8x8xf32>
    %1 = arith.truncf %0 : vector<8x8xf32> to vector<8x8xbf16>
    %c0_1 = arith.constant 0 : index
    %c0_2 = arith.constant 0 : index
    %2 = vector.load %arg2[%c0_1, %c0_2] : memref<8x128xbf16, #tpu.memory_space<vmem>>, vector<8x128xbf16>
    %cst = arith.constant dense<0.000000e+00> : vector<8x128xf32>
    %3 = tpu.matmul %1, %2, %cst {dimension_numbers = #tpu.dot_dimension_numbers<[1], [0], [0], [1], [0, 0, 1, 1], [], []>} : vector<8x8xbf16>, vector<8x128xbf16>, vector<8x128xf32> -> vector<8x128xf32>
    %c0_3 = arith.constant 0 : index
    %c0_4 = arith.constant 0 : index
    %4 = vector.load %arg3[%c0_3, %c0_4] : memref<1x128xf32, #tpu.memory_space<vmem>>, vector<1x128xf32>
    %5 = vector.broadcast %4 : vector<1x128xf32> to vector<8x128xf32>
    %6 = arith.addf %3, %5 : vector<8x128xf32>
    %cst_5 = arith.constant 0.000000e+00 : f32
    %7 = vector.broadcast %cst_5 : f32 to vector<8x128xf32>
    %8 = arith.maximumf %6, %7 : vector<8x128xf32>
    %9 = arith.truncf %8 : vector<8x128xf32> to vector<8x128xbf16>
    %c0_6 = arith.constant 0 : index
    %c0_7 = arith.constant 0 : index
    %10 = vector.load %arg4[%c0_6, %c0_7] : memref<128x128xbf16, #tpu.memory_space<vmem>>, vector<128x128xbf16>
    %cst_8 = arith.constant dense<0.000000e+00> : vector<8x128xf32>
    %11 = tpu.matmul %9, %10, %cst_8 {dimension_numbers = #tpu.dot_dimension_numbers<[1], [0], [0], [1], [0, 0, 1, 1], [], []>} : vector<8x128xbf16>, vector<128x128xbf16>, vector<8x128xf32> -> vector<8x128xf32>
    %c0_9 = arith.constant 0 : index
    %c0_10 = arith.constant 0 : index
    %12 = vector.load %arg5[%c0_9, %c0_10] : memref<1x128xf32, #tpu.memory_space<vmem>>, vector<1x128xf32>
    %13 = vector.broadcast %12 : vector<1x128xf32> to vector<8x128xf32>
    %14 = arith.addf %11, %13 : vector<8x128xf32>
    %cst_11 = arith.constant 0.000000e+00 : f32
    %15 = vector.broadcast %cst_11 : f32 to vector<8x128xf32>
    %16 = arith.maximumf %14, %15 : vector<8x128xf32>
    %17 = arith.truncf %16 : vector<8x128xf32> to vector<8x128xbf16>
    %c0_12 = arith.constant 0 : index
    %c0_13 = arith.constant 0 : index
    %18 = vector.load %arg6[%c0_12, %c0_13] : memref<128x128xbf16, #tpu.memory_space<vmem>>, vector<128x128xbf16>
    %cst_14 = arith.constant dense<0.000000e+00> : vector<8x128xf32>
    %19 = tpu.matmul %17, %18, %cst_14 {dimension_numbers = #tpu.dot_dimension_numbers<[1], [0], [0], [1], [0, 0, 1, 1], [], []>} : vector<8x128xbf16>, vector<128x128xbf16>, vector<8x128xf32> -> vector<8x128xf32>
    %c0_15 = arith.constant 0 : index
    %c0_16 = arith.constant 0 : index
    %20 = vector.load %arg7[%c0_15, %c0_16] : memref<1x128xf32, #tpu.memory_space<vmem>>, vector<1x128xf32>
    %21 = vector.broadcast %20 : vector<1x128xf32> to vector<8x128xf32>
    %22 = arith.addf %19, %21 : vector<8x128xf32>
    %23 = vector.extract_strided_slice %22 {offsets = [0, 0], sizes = [8, 4], strides = [1, 1]} : vector<8x128xf32> to vector<8x4xf32>
    %c0_17 = arith.constant 0 : index
    %c0_18 = arith.constant 0 : index
    %24 = vector.load %arg8[%c0_17, %c0_18] : memref<8x4xf32, #tpu.memory_space<vmem>>, vector<8x4xf32>
    tpu.vector_store %arg8[%c0_17, %c0_18], %23 {strides = array<i32>} : memref<8x4xf32, #tpu.memory_space<vmem>>, vector<8x4xf32>,
    return
  }
  func.func @transform_0(%arg0: i32) -> (i32, i32) {
    %c0_i32 = arith.constant 0 : i32
    %c0_i32_0 = arith.constant 0 : i32
    return %arg0, %c0_i32 : i32, i32
  }
  func.func @transform_1(%arg0: i32) -> (i32, i32) {
    %c0_i32 = arith.constant 0 : i32
    %c0_i32_0 = arith.constant 0 : i32
    %c0_i32_1 = arith.constant 0 : i32
    return %c0_i32, %c0_i32_0 : i32, i32
  }
  func.func @transform_2(%arg0: i32) -> (i32, i32) {
    %c0_i32 = arith.constant 0 : i32
    %c0_i32_0 = arith.constant 0 : i32
    %c0_i32_1 = arith.constant 0 : i32
    return %c0_i32, %c0_i32_0 : i32, i32
  }
  func.func @transform_3(%arg0: i32) -> (i32, i32) {
    %c0_i32 = arith.constant 0 : i32
    %c0_i32_0 = arith.constant 0 : i32
    %c0_i32_1 = arith.constant 0 : i32
    return %c0_i32, %c0_i32_0 : i32, i32
  }
  func.func @transform_4(%arg0: i32) -> (i32, i32) {
    %c0_i32 = arith.constant 0 : i32
    %c0_i32_0 = arith.constant 0 : i32
    %c0_i32_1 = arith.constant 0 : i32
    return %c0_i32, %c0_i32_0 : i32, i32
  }
  func.func @transform_5(%arg0: i32) -> (i32, i32) {
    %c0_i32 = arith.constant 0 : i32
    %c0_i32_0 = arith.constant 0 : i32
    %c0_i32_1 = arith.constant 0 : i32
    return %c0_i32, %c0_i32_0 : i32, i32
  }
  func.func @transform_6(%arg0: i32) -> (i32, i32) {
    %c0_i32 = arith.constant 0 : i32
    %c0_i32_0 = arith.constant 0 : i32
    %c0_i32_1 = arith.constant 0 : i32
    return %c0_i32, %c0_i32_0 : i32, i32
  }
  func.func @transform_7(%arg0: i32) -> (i32, i32) {
    %c0_i32 = arith.constant 0 : i32
    %c0_i32_0 = arith.constant 0 : i32
    return %arg0, %c0_i32 : i32, i32
  }
}

</mosaic_0001>

<bundles_post_ra>
// kernel: dqn_forward.1
= control target key start
LH: loop header
LB: loop body
LE: loop exit
PB: predicated region body
PF: predicated region fallthrough
CT: control target
= control target key end

     0   :  { %12 = vsyncpa [#allocation3], 0  ;;  %s592_s0 = inlined_call_operand.vmem [shape: f32[8,8], index: 0, kind: input, shape index: {}]   ;;  %s593_s1 = inlined_call_operand.vmem [shape: bf16[8,128], index: 1, kind: input, shape index: {}]   ;;  %s594_s2 = inlined_call_operand.vmem [shape: f32[1,128], index: 2, kind: input, shape index: {}]   ;;  %s595_s3 = inlined_call_operand.hbm [shape: bf16[128,128], index: 3, kind: input, shape index: {}]   ;;  %s596_s4 = inlined_call_operand.vmem [shape: f32[1,128], index: 4, kind: input, shape index: {}]   ;;  %s597_s5 = inlined_call_operand.hbm [shape: bf16[128,128], index: 5, kind: input, shape index: {}]   ;;  %s598_s6 = inlined_call_operand.vmem [shape: f32[1,128], index: 6, kind: input, shape index: {}]   ;;  %s599_s7 = inlined_call_operand.vmem [shape: f32[8,4], index: 7, kind: output, shape index: {}]  }
   0x1   :  { %13 = vsyncpa [#allocation5], 0  ;;  %s499_s24 = smov [#allocation2]  }
   0x2   :  { %s25_s25 = sshll.u32 %s499_s24, 4  ;;  %s26_s25 = int_to_ptr.vmem [resolvable:$true] %s25_s25 }
   0x3   :  { %s463_s26 = scalar_lea.vmem %s26_s25, 1024  ;;  %p468_p1 = scmp.lt.s32.totalorder %s26_s25, %s26_s25 }
   0x4   :  { %p464_p0 = scmp.ne.s32.totalorder %s26_s25, %s463_s26  ;;  %p469_p2 = scmp.lt.s32.totalorder %s463_s26, %s463_s26 }
   0x6   :  { %p470_p3 = por %p469_p2, %p468_p1 }
   0x8   :  { %p471_p4 = pnand %p470_p3, %p464_p0 }
   0xa   :  { %474 = shalt.err (!%p471_p4)
}
   0xb   :  { %s500_s27 = smov 64   ;;  %s501_s28 = smov 4  }
   0xc   :  { %31 = dma.hbm_to_vmem [thread:$0]  %s595_s3, 1024, %s26_s25, [#allocation3], %s500_s27, %s500_s27, %s501_s28  }
   0xd   :  { %s502_s8 = smov [#allocation4]  }
   0xe   :  { %s39_s9 = sshll.u32 %s502_s8, 4  ;;  %s40_s9 = int_to_ptr.vmem [resolvable:$true] %s39_s9 }
   0xf   :  { %s483_s10 = scalar_lea.vmem %s40_s9, 1024  ;;  %p488_p6 = scmp.lt.s32.totalorder %s40_s9, %s40_s9 }
  0x10   :  { %p484_p5 = scmp.ne.s32.totalorder %s40_s9, %s483_s10  ;;  %p489_p7 = scmp.lt.s32.totalorder %s483_s10, %s483_s10 }
  0x12   :  { %p490_p8 = por %p489_p7, %p488_p6 }
  0x14   :  { %p491_p9 = pnand %p490_p8, %p484_p5 }
  0x16   :  { %494 = shalt.err (!%p491_p9)
}
  0x17   :  { %45 = dma.hbm_to_vmem [thread:$0]  %s597_s5, 1024, %s40_s9, [#allocation5], %s500_s27, %s500_s27, %s501_s28  }
  0x18   :  { %495 = dma.done.wait [#allocation3], 1024  }
  0x19   :  { %496 = vsyncadd [#allocation3], 4294966272 }
  0x1a   :  { %497 = dma.done.wait [#allocation5], 1024  }
  0x1b   :  { %498 = vsyncadd [#allocation5], 4294966272  ;;  %v503_v0 = vmov 0.0   ;;  %vm504_vm0 = vmmov 0   ;;  %vm69_vm1 = vcmask 1043456   ;;  %v55_v2 = vld [vmem:[%s592_s0] sm:$0xff] }
  0x1c   :  { %387 = vmatprep.subr.bf16.mxu0 %v503_v0  ;;  %389 = vmatprep.mubr.msk.bf16.mxu0 %vm504_vm0, %v503_v0  ;;  %v57_v1 = vld [vmem:[%s593_s1] sm:$0xf]  ;;  %v56_v4 = vpack.c.bf16 %v55_v2, %v55_v2  ;;  %v439_v5 = vld [vmem:[#allocation2 + $0x38] sm:$0xff]   ;;  %vm65_vm2 = vcmask 64512   ;;  %v440_v6 = vld [vmem:[#allocation2 + $0x30] sm:$0xff]   ;;  %vm339_vm3 = vcmask 31744  }
  0x1d   :  { %393 = vmatprep.subr.bf16.mxu1 %v503_v0  ;;  %409 = vmatprep.mubr.msk.bf16.mxu1 %vm504_vm0, %v503_v0  ;;  %v71_v3 = vsel %vm69_vm1, %v57_v1, 0  ;;  %v441_v7 = vld [vmem:[#allocation2 + $0x28] sm:$0xff]   ;;  %v442_v8 = vld [vmem:[#allocation2 + $0x20] sm:$0xff]   ;;  %v443_v9 = vld [vmem:[#allocation2 + $0x18] sm:$0xff]  }
  0x1e   :  { %388 = vmatpush3.bf16.msra.mxu0 %v71_v3  ;;  %394 = vmatpush3.bf16.msra.mxu1 %v439_v5  ;;  %v444_v10 = vld [vmem:[#allocation2 + $0x10] sm:$0xff]   ;;  %v445_v11 = vld [vmem:[#allocation2 + $0x8] sm:$0xff]   ;;  %v446_v12 = vld [vmem:[#allocation2] sm:$0xff]  }
  0x1f   :  { %413 = vmatprep.subr.bf16.mxu0 %v503_v0  ;;  %395 = vmatprep.subr.bf16.mxu1 %v503_v0  ;;  %v447_v13 = vld [vmem:[#allocation4 + $0x38] sm:$0xff]   ;;  %v448_v14 = vld [vmem:[#allocation4 + $0x30] sm:$0xff]   ;;  %v449_v15 = vld [vmem:[#allocation4 + $0x28] sm:$0xff]  }
  0x20   :  { %v450_v16 = vld [vmem:[#allocation4 + $0x20] sm:$0xff]   ;;  %v451_v17 = vld [vmem:[#allocation4 + $0x18] sm:$0xff]   ;;  %v452_v18 = vld [vmem:[#allocation4 + $0x10] sm:$0xff]  }
  0x21   :  { %390 = vmatmul.mubr.msk.bf16.vlgmr.msra.gmra.mxu0 %vm65_vm2, %v56_v4  ;;  %v347_v19 = vld [vmem:[%s594_s2] ss:$0 sm:$0xff]  ;;  %v453_v27 = vld [vmem:[#allocation4 + $0x8] sm:$0xff]  }
  0x22   :  { %429 = vmatprep.mubr.msk.bf16.mxu0 %vm504_vm0, %v503_v0  ;;  %396 = vmatpush3.bf16.msra.mxu1 %v440_v6  ;;  %v454_v28 = vld [vmem:[#allocation4] sm:$0xff]  }
  0x23   :  { %397 = vmatprep.subr.bf16.mxu1 %v503_v0  ;;  %414 = vmatpush3.bf16.msra.mxu0 %v447_v13  ;;  %v349_v29 = vld [vmem:[%s596_s4] ss:$0 sm:$0xff] }
  0x24   :  { %415 = vmatprep.subr.bf16.mxu0 %v503_v0  ;;  %v358_v37 = vld [vmem:[%s598_s6] ss:$0 sm:$0xff] }
  0x26   :  { %398 = vmatpush3.bf16.msra.mxu1 %v441_v7 }
  0x27   :  { %399 = vmatprep.subr.bf16.mxu1 %v503_v0  ;;  %416 = vmatpush3.bf16.msra.mxu0 %v448_v14 }
  0x28   :  { %417 = vmatprep.subr.bf16.mxu0 %v503_v0 }
  0x2a   :  { %400 = vmatpush3.bf16.msra.mxu1 %v442_v8 }
  0x2b   :  { %401 = vmatprep.subr.bf16.mxu1 %v503_v0  ;;  %418 = vmatpush3.bf16.msra.mxu0 %v449_v15 }
  0x2c   :  { %419 = vmatprep.subr.bf16.mxu0 %v503_v0 }
  0x2e   :  { %402 = vmatpush3.bf16.msra.mxu1 %v443_v9 }
  0x2f   :  { %403 = vmatprep.subr.bf16.mxu1 %v503_v0  ;;  %420 = vmatpush3.bf16.msra.mxu0 %v450_v16 }
  0x30   :  { %421 = vmatprep.subr.bf16.mxu0 %v503_v0 }
  0x32   :  { %404 = vmatpush3.bf16.msra.mxu1 %v444_v10 }
  0x33   :  { %405 = vmatprep.subr.bf16.mxu1 %v503_v0  ;;  %422 = vmatpush3.bf16.msra.mxu0 %v451_v17 }
  0x34   :  { %423 = vmatprep.subr.bf16.mxu0 %v503_v0 }
  0x36   :  { %406 = vmatpush3.bf16.msra.mxu1 %v445_v11 }
  0x37   :  { %407 = vmatprep.subr.bf16.mxu1 %v503_v0  ;;  %424 = vmatpush3.bf16.msra.mxu0 %v452_v18 }
  0x38   :  { %425 = vmatprep.subr.bf16.mxu0 %v503_v0 }
  0x3a   :  { %408 = vmatpush3.bf16.msra.mxu1 %v446_v12 }
  0x3b   :  { %426 = vmatpush3.bf16.msra.mxu0 %v453_v27 }
  0x3c   :  { %427 = vmatprep.subr.bf16.mxu0 %v503_v0 }
  0x3f   :  { %428 = vmatpush3.bf16.msra.mxu0 %v454_v28 }
  0xe1   :  { %v107_v20 = vpop.f32.mrf.mxu0 }
  0xe2   :  { %v108_v21 = vadd.f32 %v347_v19, %v107_v20 }
  0xe3   :  { %v391_v22 = vpop.f32.mrf.mxu0 }
  0xe4   :  { %v113_v23 = vmax.f32 %v108_v21, 0.0 }
  0xe5   :  { %v110_v24 = vpop.f32.mrf.mxu0 }
  0xe6   :  { %v114_v25 = vpack.c.bf16 %v113_v23, %v113_v23 }
  0xe7   :  { %v392_v26 = vpop.f32.mrf.mxu0 }
  0xe8   :  { %410 = vmatmul.mubr.bf16.vlgmr.msra.gmra.mxu1 %v114_v25 }
 0x1a8   :  { %v220_v30 = vpop.f32.mrf.mxu1 }
 0x1a9   :  { %v221_v31 = vadd.f32 %v349_v29, %v220_v30 }
 0x1aa   :  { %v411_v32 = vpop.f32.mrf.mxu1 }
 0x1ab   :  { %v226_v33 = vmax.f32 %v221_v31, 0.0 }
 0x1ac   :  { %v223_v34 = vpop.f32.mrf.mxu1 }
 0x1ad   :  { %v227_v35 = vpack.c.bf16 %v226_v33, %v226_v33 }
 0x1ae   :  { %v412_v36 = vpop.f32.mrf.mxu1 }
 0x1af   :  { %430 = vmatmul.mubr.bf16.vlgmr.msra.gmra.mxu0 %v227_v35 }
 0x26f   :  { %v333_v38 = vpop.f32.mrf.mxu0 }
 0x270   :  { %v334_v39 = vadd.f32 %v358_v37, %v333_v38 }
 0x271   :  { %v431_v40 = vpop.f32.mrf.mxu0 }
 0x272   :  { %340 = vst.msk [vmem:[%s599_s7] sm:$0xff] %vm339_vm3, %v334_v39 }
 0x273   :  { %v336_v41 = vpop.f32.mrf.mxu0 }
 0x275   :  { %v432_v42 = vpop.f32.mrf.mxu0 }
 0x276   :  { %345 = vsyncpa [#allocation3], 1 }
 0x277   :  { %346 = vsyncpa [#allocation5], 1 }

</bundles_post_ra>
